<compile_context>
chip_gen: v7x
topology: tpu7x:2x2x1
jax: 0.10.0
libtpu: 0.0.40
codegen_flags: <defaults>
</compile_context>

<pallas_src>
import jax
import jax.numpy as jnp
from jax.experimental import pallas as pl
from jax.experimental.pallas import tpu as pltpu


def _round_up(x, m):
    return ((x + m - 1) // m) * m


def _mesh_edge_kernel(fv1_ref, fv2_ref, acc_ref):
    # fv{1,2}_ref: (1, L, 3, tf) -- corner-major, xyz on sublanes, faces on lanes.
    # acc_ref:     (1, 3, tf)    -- per-batch running sum of (d1 - d2)^2 over
    #              faces *and* corners, resident across the face-tile grid axis.
    @pl.when(pl.program_id(1) == 0)
    def _():
        acc_ref[...] = jnp.zeros_like(acc_ref)

    L = fv1_ref.shape[1]
    partial = jnp.zeros(acc_ref.shape[1:], jnp.float32)      # (3, tf)
    for l in range(L):                                        # L is tiny (3 or 4)
        ln = (l + 1) % L                                      # cyclic next corner
        e1 = fv1_ref[0, l] - fv1_ref[0, ln]                   # (3, tf)
        e2 = fv2_ref[0, l] - fv2_ref[0, ln]
        diff = e1 * e1 - e2 * e2                              # d1 - d2
        partial = partial + diff * diff                       # pure VPU adds
    acc_ref[0] += partial


def mesh_edge_length_mse(verts1, verts2, faces, *, f_tile=8192):
    """Fused MSE(d1, d2) of squared edge vectors of two corresponding meshes."""
    B, N, D = verts1.shape
    assert D == 3 and verts2.shape == verts1.shape
    Bf, F, L = faces.shape
    assert Bf == B

    # Lane-dense face tile: multiple of 128, no larger than the padded face count.
    f_tile = max(128, (min(f_tile, _round_up(F, 128)) // 128) * 128)
    Fp = _round_up(F, f_tile)
    n_f = Fp // f_tile

    # TODO(synk): the data-dependent vertex gather (torch.gather over faces) has
    # no clean single-op Pallas equivalent on TPU; it is done in XLA, but the
    # gather is written to produce the lane-dense (B, L, 3, Fp) layout directly
    # so no separate large transpose of the gathered tensors is needed.
    # Padded faces index vertex 0 -> zero edges -> zero loss contribution.
    faces_p = jnp.pad(faces, ((0, 0), (0, Fp - F), (0, 0)))
    faces_t = jnp.transpose(faces_p, (0, 2, 1))               # (B, L, Fp) int32
    b_idx = jnp.arange(B)[:, None, None, None]                # (B, 1, 1, 1)
    v_idx = faces_t[:, :, None, :]                            # (B, L, 1, Fp)
    d_idx = jnp.arange(3)[None, None, :, None]                # (1, 1, 3, 1)
    fv1_t = verts1[b_idx, v_idx, d_idx].astype(jnp.float32)   # (B, L, 3, Fp)
    fv2_t = verts2[b_idx, v_idx, d_idx].astype(jnp.float32)

    acc = pl.pallas_call(
        _mesh_edge_kernel,
        out_shape=jax.ShapeDtypeStruct((B, 3, f_tile), jnp.float32),
        grid_spec=pltpu.PrefetchScalarGridSpec(
            num_scalar_prefetch=0,
            grid=(B, n_f),
            in_specs=[
                pl.BlockSpec((1, L, 3, f_tile), lambda b, f: (b, 0, 0, f)),
                pl.BlockSpec((1, L, 3, f_tile), lambda b, f: (b, 0, 0, f)),
            ],
            out_specs=pl.BlockSpec((1, 3, f_tile), lambda b, f: (b, 0, 0)),
        ),
        compiler_params=pltpu.CompilerParams(
            dimension_semantics=("parallel", "arbitrary")),
    )(fv1_t, fv2_t)

    # Padding contributes exactly zero; divide by the true element count.
    return jnp.sum(acc) / (B * F * L * 3)


def mesh_edge_length_loss(verts1, verts2, faces, metric="mse", *, f_tile=8192):
    """Forward pass of MeshEdgeLengthLoss (metric defaults to MSE)."""
    if metric == "mse":
        return mesh_edge_length_mse(verts1, verts2, faces, f_tile=f_tile)
    # TODO(synk): arbitrary `metric` callables (the PyTorch ctor arg) would be
    # applied to the d1/d2 tensors outside the fused kernel; only MSE is fused.
    raise NotImplementedError(f"metric={metric!r}")


def _reference_loss(verts1, verts2, faces):
    """Pure-JAX reference of the module's forward (metric = MSE)."""
    B, _, _ = verts1.shape
    b_idx = jnp.arange(B)[:, None, None]
    fv1 = verts1[b_idx, faces]                                # (B, F, L, 3)
    fv2 = verts2[b_idx, faces]
    fv1n = jnp.concatenate([fv1[:, :, 1:], fv1[:, :, :1]], axis=2)
    fv2n = jnp.concatenate([fv2[:, :, 1:], fv2[:, :, :1]], axis=2)
    e1 = fv1 - fv1n
    e2 = fv2 - fv2n
    d1 = e1 * e1
    d2 = e2 * e2
    return jnp.mean((d1 - d2) ** 2)


if __name__ == "__main__":
    key = jax.random.PRNGKey(0)
    k1, k2, k3 = jax.random.split(key, 3)
    B, N, F, L = 2, 32, 300, 3
    verts1 = jax.random.normal(k1, (B, N, 3), dtype=jnp.float32)
    verts2 = verts1 + 0.1 * jax.random.normal(k2, (B, N, 3), dtype=jnp.float32)
    faces = jax.random.randint(k3, (B, F, L), 0, N, dtype=jnp.int32)

    # Small f_tile here so the run exercises multiple face tiles and the
    # resident accumulator path (F=300 -> 3 tiles of 128).
    loss = mesh_edge_length_loss(verts1, verts2, faces, f_tile=128)
    loss = jax.block_until_ready(loss)

    ref = _reference_loss(verts1, verts2, faces)
    assert jnp.allclose(loss, ref, rtol=1e-4, atol=1e-6), (loss, ref)
    print("KERNEL_OK")
</pallas_src>

<mosaic_0001>
module attributes {stable_mosaic.version = 11 : i64} {
  func.func @_mesh_edge_kernel(%arg0: i32, %arg1: i32, %arg2: memref<1x3x3x128xf32, #tpu.memory_space<vmem>>, %arg3: memref<1x3x3x128xf32, #tpu.memory_space<vmem>>, %arg4: memref<1x3x128xf32, #tpu.memory_space<vmem>>) attributes {dimension_semantics = [#tpu.dimension_semantics<parallel>, #tpu.dimension_semantics<arbitrary>], iteration_bounds = array<i64: 2, 3>, scalar_prefetch = 0 : i64, scratch_operands = 0 : i64, tpu.core_type = #tpu.core_type<tc>, window_params = [{transform_indices = @transform_0, window_bounds = array<i64: 1, 3, 3, 128>}, {transform_indices = @transform_1, window_bounds = array<i64: 1, 3, 3, 128>}, {transform_indices = @transform_2, window_bounds = array<i64: 1, 3, 128>}]} {
    %c0_i32 = arith.constant 0 : i32
    %0 = arith.cmpi eq, %arg1, %c0_i32 : i32
    %1 = arith.extui %0 : i1 to i32
    %c0_i32_0 = arith.constant 0 : i32
    %2 = arith.cmpi ne, %1, %c0_i32_0 : i32
    scf.if %2 {
      %cst_52 = arith.constant 0.000000e+00 : f32
      %55 = vector.broadcast %cst_52 : f32 to vector<1x3x128xf32>
      %c0_53 = arith.constant 0 : index
      %c0_54 = arith.constant 0 : index
      %c0_55 = arith.constant 0 : index
      %56 = vector.load %arg4[%c0_53, %c0_54, %c0_55] : memref<1x3x128xf32, #tpu.memory_space<vmem>>, vector<1x3x128xf32>
      tpu.vector_store %arg4[%c0_53, %c0_54, %c0_55], %55 {strides = array<i32>} : memref<1x3x128xf32, #tpu.memory_space<vmem>>, vector<1x3x128xf32>,
    } else {
    }
    %cst = arith.constant 0.000000e+00 : f32
    %3 = vector.broadcast %cst : f32 to vector<3x128xf32>
    %c0 = arith.constant 0 : index
    %c0_1 = arith.constant 0 : index
    %c0_2 = arith.constant 0 : index
    %c0_3 = arith.constant 0 : index
    %4 = vector.load %arg2[%c0, %c0_1, %c0_2, %c0_3] : memref<1x3x3x128xf32, #tpu.memory_space<vmem>>, vector<1x1x3x128xf32>
    %5 = vector.shape_cast %4 : vector<1x1x3x128xf32> to vector<3x128xf32>
    %c0_4 = arith.constant 0 : index
    %c1 = arith.constant 1 : index
    %c0_5 = arith.constant 0 : index
    %c0_6 = arith.constant 0 : index
    %6 = vector.load %arg2[%c0_4, %c1, %c0_5, %c0_6] : memref<1x3x3x128xf32, #tpu.memory_space<vmem>>, vector<1x1x3x128xf32>
    %7 = vector.shape_cast %6 : vector<1x1x3x128xf32> to vector<3x128xf32>
    %8 = arith.subf %5, %7 : vector<3x128xf32>
    %c0_7 = arith.constant 0 : index
    %c0_8 = arith.constant 0 : index
    %c0_9 = arith.constant 0 : index
    %c0_10 = arith.constant 0 : index
    %9 = vector.load %arg3[%c0_7, %c0_8, %c0_9, %c0_10] : memref<1x3x3x128xf32, #tpu.memory_space<vmem>>, vector<1x1x3x128xf32>
    %10 = vector.shape_cast %9 : vector<1x1x3x128xf32> to vector<3x128xf32>
    %c0_11 = arith.constant 0 : index
    %c1_12 = arith.constant 1 : index
    %c0_13 = arith.constant 0 : index
    %c0_14 = arith.constant 0 : index
    %11 = vector.load %arg3[%c0_11, %c1_12, %c0_13, %c0_14] : memref<1x3x3x128xf32, #tpu.memory_space<vmem>>, vector<1x1x3x128xf32>
    %12 = vector.shape_cast %11 : vector<1x1x3x128xf32> to vector<3x128xf32>
    %13 = arith.subf %10, %12 : vector<3x128xf32>
    %14 = arith.mulf %8, %8 : vector<3x128xf32>
    %15 = arith.mulf %13, %13 : vector<3x128xf32>
    %16 = arith.subf %14, %15 : vector<3x128xf32>
    %17 = arith.mulf %16, %16 : vector<3x128xf32>
    %18 = arith.addf %3, %17 : vector<3x128xf32>
    %c0_15 = arith.constant 0 : index
    %c1_16 = arith.constant 1 : index
    %c0_17 = arith.constant 0 : index
    %c0_18 = arith.constant 0 : index
    %19 = vector.load %arg2[%c0_15, %c1_16, %c0_17, %c0_18] : memref<1x3x3x128xf32, #tpu.memory_space<vmem>>, vector<1x1x3x128xf32>
    %20 = vector.shape_cast %19 : vector<1x1x3x128xf32> to vector<3x128xf32>
    %c0_19 = arith.constant 0 : index
    %c2 = arith.constant 2 : index
    %c0_20 = arith.constant 0 : index
    %c0_21 = arith.constant 0 : index
    %21 = vector.load %arg2[%c0_19, %c2, %c0_20, %c0_21] : memref<1x3x3x128xf32, #tpu.memory_space<vmem>>, vector<1x1x3x128xf32>
    %22 = vector.shape_cast %21 : vector<1x1x3x128xf32> to vector<3x128xf32>
    %23 = arith.subf %20, %22 : vector<3x128xf32>
    %c0_22 = arith.constant 0 : index
    %c1_23 = arith.constant 1 : index
    %c0_24 = arith.constant 0 : index
    %c0_25 = arith.constant 0 : index
    %24 = vector.load %arg3[%c0_22, %c1_23, %c0_24, %c0_25] : memref<1x3x3x128xf32, #tpu.memory_space<vmem>>, vector<1x1x3x128xf32>
    %25 = vector.shape_cast %24 : vector<1x1x3x128xf32> to vector<3x128xf32>
    %c0_26 = arith.constant 0 : index
    %c2_27 = arith.constant 2 : index
    %c0_28 = arith.constant 0 : index
    %c0_29 = arith.constant 0 : index
    %26 = vector.load %arg3[%c0_26, %c2_27, %c0_28, %c0_29] : memref<1x3x3x128xf32, #tpu.memory_space<vmem>>, vector<1x1x3x128xf32>
    %27 = vector.shape_cast %26 : vector<1x1x3x128xf32> to vector<3x128xf32>
    %28 = arith.subf %25, %27 : vector<3x128xf32>
    %29 = arith.mulf %23, %23 : vector<3x128xf32>
    %30 = arith.mulf %28, %28 : vector<3x128xf32>
    %31 = arith.subf %29, %30 : vector<3x128xf32>
    %32 = arith.mulf %31, %31 : vector<3x128xf32>
    %33 = arith.addf %18, %32 : vector<3x128xf32>
    %c0_30 = arith.constant 0 : index
    %c2_31 = arith.constant 2 : index
    %c0_32 = arith.constant 0 : index
    %c0_33 = arith.constant 0 : index
    %34 = vector.load %arg2[%c0_30, %c2_31, %c0_32, %c0_33] : memref<1x3x3x128xf32, #tpu.memory_space<vmem>>, vector<1x1x3x128xf32>
    %35 = vector.shape_cast %34 : vector<1x1x3x128xf32> to vector<3x128xf32>
    %c0_34 = arith.constant 0 : index
    %c0_35 = arith.constant 0 : index
    %c0_36 = arith.constant 0 : index
    %c0_37 = arith.constant 0 : index
    %36 = vector.load %arg2[%c0_34, %c0_35, %c0_36, %c0_37] : memref<1x3x3x128xf32, #tpu.memory_space<vmem>>, vector<1x1x3x128xf32>
    %37 = vector.shape_cast %36 : vector<1x1x3x128xf32> to vector<3x128xf32>
    %38 = arith.subf %35, %37 : vector<3x128xf32>
    %c0_38 = arith.constant 0 : index
    %c2_39 = arith.constant 2 : index
    %c0_40 = arith.constant 0 : index
    %c0_41 = arith.constant 0 : index
    %39 = vector.load %arg3[%c0_38, %c2_39, %c0_40, %c0_41] : memref<1x3x3x128xf32, #tpu.memory_space<vmem>>, vector<1x1x3x128xf32>
    %40 = vector.shape_cast %39 : vector<1x1x3x128xf32> to vector<3x128xf32>
    %c0_42 = arith.constant 0 : index
    %c0_43 = arith.constant 0 : index
    %c0_44 = arith.constant 0 : index
    %c0_45 = arith.constant 0 : index
    %41 = vector.load %arg3[%c0_42, %c0_43, %c0_44, %c0_45] : memref<1x3x3x128xf32, #tpu.memory_space<vmem>>, vector<1x1x3x128xf32>
    %42 = vector.shape_cast %41 : vector<1x1x3x128xf32> to vector<3x128xf32>
    %43 = arith.subf %40, %42 : vector<3x128xf32>
    %44 = arith.mulf %38, %38 : vector<3x128xf32>
    %45 = arith.mulf %43, %43 : vector<3x128xf32>
    %46 = arith.subf %44, %45 : vector<3x128xf32>
    %47 = arith.mulf %46, %46 : vector<3x128xf32>
    %48 = arith.addf %33, %47 : vector<3x128xf32>
    %c0_46 = arith.constant 0 : index
    %c0_47 = arith.constant 0 : index
    %c0_48 = arith.constant 0 : index
    %49 = vector.load %arg4[%c0_46, %c0_47, %c0_48] : memref<1x3x128xf32, #tpu.memory_space<vmem>>, vector<1x3x128xf32>
    %50 = vector.shape_cast %49 : vector<1x3x128xf32> to vector<3x128xf32>
    %51 = arith.addf %50, %48 : vector<3x128xf32>
    %c0_49 = arith.constant 0 : index
    %c0_50 = arith.constant 0 : index
    %c0_51 = arith.constant 0 : index
    %52 = vector.load %arg4[%c0_49, %c0_50, %c0_51] : memref<1x3x128xf32, #tpu.memory_space<vmem>>, vector<1x3x128xf32>
    %53 = vector.shape_cast %52 : vector<1x3x128xf32> to vector<3x128xf32>
    %54 = vector.shape_cast %51 : vector<3x128xf32> to vector<1x3x128xf32>
    tpu.vector_store %arg4[%c0_49, %c0_50, %c0_51], %54 {strides = array<i32>} : memref<1x3x128xf32, #tpu.memory_space<vmem>>, vector<1x3x128xf32>,
    return
  }
  func.func @transform_0(%arg0: i32, %arg1: i32) -> (i32, i32, i32, i32) {
    %c0_i32 = arith.constant 0 : i32
    %c0_i32_0 = arith.constant 0 : i32
    %c0_i32_1 = arith.constant 0 : i32
    return %arg0, %c0_i32, %c0_i32_0, %arg1 : i32, i32, i32, i32
  }
  func.func @transform_1(%arg0: i32, %arg1: i32) -> (i32, i32, i32, i32) {
    %c0_i32 = arith.constant 0 : i32
    %c0_i32_0 = arith.constant 0 : i32
    %c0_i32_1 = arith.constant 0 : i32
    return %arg0, %c0_i32, %c0_i32_0, %arg1 : i32, i32, i32, i32
  }
  func.func @transform_2(%arg0: i32, %arg1: i32) -> (i32, i32, i32) {
    %c0_i32 = arith.constant 0 : i32
    %c0_i32_0 = arith.constant 0 : i32
    %c0_i32_1 = arith.constant 0 : i32
    return %arg0, %c0_i32, %c0_i32_0 : i32, i32, i32
  }
}

</mosaic_0001>

<bundles_post_ra>
// kernel: tpu_custom_call.1
= control target key start
LH: loop header
LB: loop body
LE: loop exit
PB: predicated region body
PF: predicated region fallthrough
CT: control target
= control target key end

     0   :  { %s560_s9 = smov 0   ;;  %s562_s10 = smov 0   ;;  %s669_s0 = inlined_call_operand.vmem [shape: f32[2,3,3,384], index: 0, kind: input, shape index: {}]   ;;  %s670_s1 = inlined_call_operand.vmem [shape: f32[2,3,3,384], index: 1, kind: input, shape index: {}]   ;;  %s671_s2 = inlined_call_operand.vmem [shape: f32[2,3,128], index: 2, kind: output, shape index: {}]  }
   0x1   :  { %s564_s11 = smov 0   ;;  %s566_s12 = smov 0  }
   0x2   :  { %s568_s13 = smov 0   ;;  %s570_s14 = smov 0  }
   0x3   :  { %s572_s15 = smov 0  }
   0x4 LB: > { %s21_s16 = sadd.s32 1, %s534_s13  ;;  %s24_s17 = sadd.s32 1, %s538_s14  ;;  %s542_s15 = sphi %s572_s15, %s12_s15   ;;  %s538_s14 = sphi %s570_s14, %s678_s14   ;;  %s534_s13 = sphi %s568_s13, %s677_s13   ;;  %s530_s12 = sphi %s566_s12, %s676_s12   ;;  %s526_s11 = sphi %s564_s11, %s675_s11   ;;  %s522_s10 = sphi %s562_s10, %s674_s10   ;;  %s518_s9 = sphi %s560_s9, %s673_s9  }
   0x5   : > { %p22_p0 = scmp.ge.s32.totalorder %s21_s16, 3  ;;  %p40_p1 = scmp.ne.s32.totalorder %s522_s10, %s518_s9 }
   0x6   : > { %p41_p2 = scmp.eq.s32.totalorder %s542_s15, 0  ;;  %s33_s22 = sadd.s32 1, %s522_s10 }
   0x7   : > { %s680_s16 = smov (%p22_p0, %s21_s16), 0  ;;  %s682_s17 = smov (!%p22_p0, %s24_s17), %s538_s14 }
   0x8   : > { %p603_p3 = por %p41_p2, %p40_p1  ;;  %p26_p4 = scmp.ge.s32.totalorder %s682_s17, 2 }
   0x9   : > { %s29_s19 = ssub.s32 %s534_s13, %s680_s16  ;;  %p414_p6 = scmp.ge.s32.totalorder %s542_s15, 6 }
   0xa   : > { %s684_s17 = smov (%p26_p4, %s682_s17), 0 }
   0xb   : > { %s28_s20 = ssub.s32 %s538_s14, %s684_s17  ;;  %120 = sbr.rel (%p414_p6) target bundleno = 36 (0x24), region = 16 }
   0xc   : > { %s30_s21 = sor.u32 %s29_s19, %s28_s20 }
   0xd   : > { %p31_p5 = scmp.eq.s32.totalorder %s30_s21, 0 }
   0xf   : > { %s615_s23 = scalar_select %p31_p5, %s522_s10, %s33_s22  }
  0x12   : > { %123 = sbr.rel (!%p603_p3) target bundleno = 27 (0x1b), region = 20  ;;  %s125_s24 = sand.u32 (%p603_p3), 1, %s522_s10  }
  0x13   : > { %s427_s25 = smul.u32 (%p603_p3), 9, %s538_s14 }
  0x14   : > { %s426_s26 = smul.u32 (%p603_p3), 12, %s125_s24 }
  0x15   : > { %s129_s27 = sadd.s32 (%p603_p3), %s534_s13, %s427_s25 }
  0x16   : > { %s415_s28 = sshll.u32 (%p603_p3), %s129_s27, 2  ;;  %s127_s4 = scalar_lea.vmem (%p603_p3), [#allocation2], %s426_s26 }
  0x17   : > { %s131_s3 = scalar_lea.vmem (%p603_p3), %s669_s0, %s415_s28 }
  0x18   : > { %v147_v0 = vld [vmem:[%s131_s3] sm:$0xf] (%p603_p3)  ;;  %v149_v1 = vld [vmem:[%s131_s3 + $0xc] sm:$0xf] (%p603_p3)  ;;  %v151_v2 = vld [vmem:[%s131_s3 + $0x18] sm:$0xf] (%p603_p3) }
  0x19   : > { %148 = vst [vmem:[%s127_s4] sm:$0xf] %v147_v0  ;;  %150 = vst [vmem:[%s127_s4 + $0x4] sm:$0xf] %v149_v1 }
  0x1a   : > { %152 = vst [vmem:[%s127_s4 + $0x8] sm:$0xf] %v151_v2 }
  0x1b PF: > { %181 = sbr.rel (!%p603_p3) target bundleno = 36 (0x24), region = 61  ;;  %s183_s5 = sand.u32 (%p603_p3), 1, %s522_s10  }
  0x1c   : > { %s429_s6 = smul.u32 (%p603_p3), 9, %s538_s14 }
  0x1d   : > { %s428_s7 = smul.u32 (%p603_p3), 12, %s183_s5 }
  0x1e   : > { %s187_s8 = sadd.s32 (%p603_p3), %s534_s13, %s429_s6 }
  0x1f   : > { %s416_s19 = sshll.u32 (%p603_p3), %s187_s8, 2  ;;  %s185_s24 = scalar_lea.vmem (%p603_p3), [#allocation3], %s428_s7 }
  0x20   : > { %s189_s22 = scalar_lea.vmem (%p603_p3), %s670_s1, %s416_s19 }
  0x21   : > { %v205_v3 = vld [vmem:[%s189_s22] sm:$0xf] (%p603_p3)  ;;  %v207_v4 = vld [vmem:[%s189_s22 + $0xc] sm:$0xf] (%p603_p3)  ;;  %v209_v5 = vld [vmem:[%s189_s22 + $0x18] sm:$0xf] (%p603_p3) }
  0x22   : > { %206 = vst [vmem:[%s185_s24] sm:$0xf] %v205_v3  ;;  %208 = vst [vmem:[%s185_s24 + $0x4] sm:$0xf] %v207_v4 }
  0x23   : > { %210 = vst [vmem:[%s185_s24 + $0x8] sm:$0xf] %v209_v5 }
  0x24 PF: > { %p417_p7 = scmp.ge.s32.totalorder %s542_s15, 1  ;;  %p238_p8 = scmp.lt.s32.totalorder %s542_s15, 7 }
  0x26   : > { %p239_p9 = pnand %p417_p7, %p238_p8 }
  0x27   : > { %s245_s18 = sand.u32 (!%p239_p9), 1, %s518_s9   ;;  %p276_p10 = scmp.lt.s32.totalorder (!%p239_p9), %s530_s12, 1 }
  0x28   : > { %242 = sbr.rel (%p239_p9) target bundleno = 71 (0x47), region = 102  ;;  %p419_p11 = scmp.ne.s32.totalorder (!%p239_p9), %s526_s11, 0 }
  0x29   : > { %s430_s25 = smul.u32 (!%p239_p9), 12, %s245_s18 }
  0x2b   : > { %s247_s30 = scalar_lea.vmem (!%p239_p9), [#allocation2], %s430_s25  ;;  %s254_s3 = scalar_lea.vmem (!%p239_p9), [#allocation3], %s430_s25 }
  0x2f   : > { %s686_s12 = smov (!%p276_p10, %s530_s12), 1  ;;  %283 = sbr.rel (%p419_p11) target bundleno = 54 (0x36), region = 114 }
  0x30   : > { %s418_s26 = sshll.u32 %s686_s12, 2  ;;  %v544_v6 = vmov (!%p419_p11), 0.0  }
  0x31   : > { %s642_s29 = scalar_lea.vmem %s671_s2, %s418_s26 }
  0x32   : > { %284 = vst [vmem:[%s642_s29] sm:$0x7] (!%p419_p11), %v544_v6 }
  0x36 PF: > { %v285_v7 = vld [vmem:[%s247_s30] sm:$0x7]  ;;  %v420_v8 = vld [vmem:[%s247_s30 + $0x4] sm:$0x7]  ;;  %v289_v9 = vld [vmem:[%s254_s3] sm:$0x7] }
  0x37   : > { %v288_v10 = vsub.f32 %v285_v7, %v420_v8  ;;  %v421_v11 = vld [vmem:[%s254_s3 + $0x4] sm:$0x7]  ;;  %v422_v12 = vld [vmem:[%s247_s30 + $0x8] sm:$0x7]  ;;  %v423_v13 = vld [vmem:[%s254_s3 + $0x8] sm:$0x7] }
  0x38   : > { %v292_v14 = vsub.f32 %v289_v9, %v421_v11  ;;  %v300_v15 = vsub.f32 %v420_v8, %v422_v12  ;;  %v303_v16 = vsub.f32 %v421_v11, %v423_v13  ;;  %v309_v17 = vsub.f32 %v422_v12, %v285_v7 }
  0x39   : > { %v293_v18 = vmul.f32 %v288_v10, %v288_v10  ;;  %v310_v19 = vsub.f32 %v423_v13, %v289_v9  ;;  %v316_v32 = vld [vmem:[%s642_s29] sm:$0x7] }
  0x3a   : > { %v294_v20 = vmul.f32 %v292_v14, %v292_v14  ;;  %v304_v21 = vmul.f32 %v300_v15, %v300_v15  ;;  %v305_v22 = vmul.f32 %v303_v16, %v303_v16  ;;  %v311_v23 = vmul.f32 %v309_v17, %v309_v17 }
  0x3b   : > { %v312_v24 = vmul.f32 %v310_v19, %v310_v19 }
  0x3c   : > { %v295_v25 = vsub.f32 %v293_v18, %v294_v20  ;;  %v306_v26 = vsub.f32 %v304_v21, %v305_v22 }
  0x3d   : > { %v313_v27 = vsub.f32 %v311_v23, %v312_v24 }
  0x3e   : > { %v296_v28 = vmul.f32 %v295_v25, %v295_v25  ;;  %v307_v29 = vmul.f32 %v306_v26, %v306_v26 }
  0x3f   : > { %v314_v30 = vmul.f32 %v313_v27, %v313_v27 }
  0x40   : > { %v308_v31 = vadd.f32 %v307_v29, %v296_v28 }
  0x42   : > { %v315_v33 = vadd.f32 %v314_v30, %v308_v31 }
  0x44   : > { %v317_v34 = vadd.f32 %v316_v32, %v315_v33 }
  0x46   : > { %318 = vst [vmem:[%s642_s29] sm:$0x7] %v317_v34 }
  0x47 PF: > { %s12_s15 = sadd.s32 1, %s542_s15   ;;  %s673_s9 = smov %s522_s10 }
  0x48   : > { %p9_p12 = scmp.ge.s32.totalorder %s12_s15, 8   ;;  %s674_s10 = smov %s615_s23 }
  0x49   : > { %s675_s11 = smov %s534_s13  ;;  %s676_s12 = smov %s538_s14 }
  0x4a   : > { %s677_s13 = smov %s680_s16  ;;  %s678_s14 = smov %s684_s17 }
  0x4b   :  { %11 = sbr.rel (!%p9_p12) target bundleno = 4 (0x4), region = 161 }

</bundles_post_ra>
